<compile_context>
chip_gen: v5e
topology: v5e:2x2
jax: 0.10.0
libtpu: 0.0.40
codegen_flags: <defaults>
</compile_context>

<pallas_src>
import jax
import jax.numpy as jnp
from jax.experimental import pallas as pl
from jax.experimental.pallas import tpu as pltpu

H1 = 128       # fc1 output features
H2 = 64        # fc2 output features (logical)
H2_PAD = 128   # fc2 padded to a full 128-lane vreg / MXU column block


def spam_mlp_kernel(x_ref, w1_ref, b1_ref, w2_ref, b2_ref, w3_ref, b3_ref, o_ref):
    # Cast the x tile to bf16 in-kernel (avoids a separate wrapper pass over x);
    # the explicit cast keeps both fc1 operands bf16 so the MXU fast path is used.
    x = x_ref[...].astype(jnp.bfloat16)

    # fc1 + ReLU : (TB, Dp) @ (Dp, 128) -> (TB, 128), f32 accumulation on the MXU.
    h1 = jnp.dot(x, w1_ref[...], preferred_element_type=jnp.float32)
    h1 = jnp.maximum(h1 + b1_ref[...], 0.0)

    # fc2 + ReLU : (TB, 128) @ (128, 128) -> (TB, 128). Padded columns have zero
    # weights and zero bias, so they stay exactly 0 after ReLU.
    h2 = jnp.dot(h1.astype(jnp.bfloat16), w2_ref[...],
                 preferred_element_type=jnp.float32)
    h2 = jnp.maximum(h2 + b2_ref[...], 0.0)

    # fc3 (out_features = 1): M=1 matmul on the (otherwise idle) MXU, contracting
    # the lane dim of h2 with the (1, 128) w3 row -> lane-dense (1, TB) logits.
    logits = jax.lax.dot_general(
        w3_ref[...], h2.astype(jnp.bfloat16),
        dimension_numbers=(((1,), (1,)), ((), ())),
        preferred_element_type=jnp.float32)
    o_ref[...] = (logits + b3_ref[0, 0]).astype(o_ref.dtype)


def _round_up(n, m):
    return ((n + m - 1) // m) * m


def _device_kind():
    try:
        return jax.devices()[0].device_kind.lower()
    except Exception:
        return ""


def _vmem_limit_bytes():
    kind = _device_kind()
    if "v7" in kind or "7x" in kind:
        return 48 * 1024 * 1024      # v7x: 64 MiB physical per TC, leave headroom
    return 96 * 1024 * 1024          # v5e/v5p/v6e: 128 MiB physical VMEM


def _pick_batch_tile(B, d_pad, vmem_limit, requested=None):
    """Biggest batch tile (target 512) whose working set fits the VMEM budget."""
    if requested is not None:
        return requested
    tb = 512

    def vmem_use(t):
        x_bufs = 2 * t * d_pad * 4                       # f32 x tile, double-buffered
        weights = d_pad * H1 * 2 * 2 + H1 * H2_PAD * 2 * 2   # worst case 2 buffers
        temps = t * d_pad * 2 + t * H1 * 4 + t * H2_PAD * 4 + t * H2_PAD * 2
        return x_bufs + weights + temps + (2 << 20)      # + slack for misc/output

    while tb > 128 and vmem_use(tb) > int(vmem_limit * 0.75):
        tb //= 2
    return min(tb, _round_up(max(B, 1), 8))


def spam_classifier_forward(x, params, *, batch_tile=None):
    """x: [B, D] float (f32 or bf16).

    params (float32, weights in [in, out] layout so y = x @ W + b, matching
    torch's x @ W.T for its [out, in] layout):
      w1 [D,128], b1 [1,128], w2 [128,64], b2 [1,64], w3 [64,1], b3 [1,1].
    """
    B, D = x.shape
    d_pad = _round_up(D, 128)
    vmem_limit = _vmem_limit_bytes()
    tb = _pick_batch_tile(B, d_pad, vmem_limit, batch_tile)
    num_tiles = pl.cdiv(B, tb)
    b_pad = num_tiles * tb

    # x stays in its float dtype (no cast pass); pad only when not tile-aligned.
    x_p = x if (b_pad == B and d_pad == D) else jnp.pad(
        x, ((0, b_pad - B), (0, d_pad - D)))

    # bf16 weights for the MXU; f32 biases / accumulation.  Padded rows/cols are
    # zero, so all padding is mathematically a no-op.
    w1 = params["w1"].astype(jnp.bfloat16)
    if d_pad != D:
        w1 = jnp.pad(w1, ((0, d_pad - D), (0, 0)))
    b1 = params["b1"].astype(jnp.float32)
    w2 = jnp.pad(params["w2"].astype(jnp.bfloat16), ((0, 0), (0, H2_PAD - H2)))
    b2 = jnp.pad(params["b2"].astype(jnp.float32), ((0, 0), (0, H2_PAD - H2)))
    w3_row = jnp.pad(params["w3"].astype(jnp.bfloat16).T, ((0, 0), (0, H2_PAD - H2)))
    b3 = params["b3"].reshape(1, 1).astype(jnp.float32)

    def build_call(const_mode):
        def const(shape):
            kwargs = {} if const_mode is None else {"pipeline_mode": const_mode}
            return pl.BlockSpec(shape, lambda i: (0, 0), **kwargs)
        return pl.pallas_call(
            spam_mlp_kernel,
            out_shape=jax.ShapeDtypeStruct((1, b_pad), jnp.float32),
            grid=(num_tiles,),
            in_specs=[
                pl.BlockSpec((tb, d_pad), lambda i: (i, 0)),        # x batch tile
                const((d_pad, H1)),                                 # w1 (resident)
                const((1, H1)),                                     # b1
                const((H1, H2_PAD)),                                # w2 (padded)
                const((1, H2_PAD)),                                 # b2 (padded)
                const((1, H2_PAD)),                                 # w3 row (padded)
                pl.BlockSpec(memory_space=pltpu.MemorySpace.SMEM),  # b3 scalar
            ],
            out_specs=pl.BlockSpec((1, tb), lambda i: (0, i)),      # lane-dense logits
            compiler_params=pltpu.CompilerParams(
                dimension_semantics=("parallel",),
                vmem_limit_bytes=vmem_limit,
            ),
        )

    args = (x_p, w1, b1, w2, b2, w3_row, b3)
    try:
        # Constant-index operands never change across grid steps -> single buffer
        # (saves e.g. d_pad*128*2B for w1 vs. default double-buffering).
        out = build_call(pl.Buffered(1))(*args)
    except Exception:
        # Fallback if pipeline_mode on pallas_call BlockSpecs is unsupported here.
        out = build_call(None)(*args)

    # TODO(synk): for very large input_dim (e.g. 10k+ TF-IDF features) add a
    # trailing "arbitrary" K-tile grid axis over d_pad with an f32 VMEM scratch
    # accumulator for h1 (pl.when init/finalize) so w1 streams instead of being
    # fully VMEM-resident (matters most on v7x's 64 MiB per-TC VMEM, where the
    # batch-"parallel" axis also duplicates resident weights per TensorCore).
    return out.reshape(b_pad, 1)[:B]


def init_params(key, input_dim):
    """Deterministic init mimicking nn.Linear default: U(-1/sqrt(fan_in), +1/sqrt(fan_in))."""
    dims = [(input_dim, H1), (H1, H2), (H2, 1)]
    params = {}
    for i, (fan_in, fan_out) in enumerate(dims, start=1):
        key, kw, kb = jax.random.split(key, 3)
        bound = 1.0 / jnp.sqrt(float(fan_in))
        params[f"w{i}"] = jax.random.uniform(
            kw, (fan_in, fan_out), jnp.float32, minval=-bound, maxval=bound)
        params[f"b{i}"] = jax.random.uniform(
            kb, (1, fan_out), jnp.float32, minval=-bound, maxval=bound)
    return params


def reference_forward(x, params):
    h1 = jnp.maximum(x @ params["w1"] + params["b1"], 0.0)
    h2 = jnp.maximum(h1 @ params["w2"] + params["b2"], 0.0)
    return h2 @ params["w3"] + params["b3"]


if __name__ == "__main__":
    key = jax.random.PRNGKey(0)
    k_x, k_p = jax.random.split(key)

    batch, input_dim = 8, 32  # small demo shapes, consistent with Linear(input_dim, 128)
    x = jax.random.normal(k_x, (batch, input_dim), dtype=jnp.float32)
    params = init_params(k_p, input_dim)

    out = jax.block_until_ready(spam_classifier_forward(x, params))
    ref = reference_forward(x, params)

    assert out.shape == (batch, 1)
    # bf16 operands -> loosened tolerance vs. the pure-f32 reference.
    assert jnp.allclose(out, ref, atol=5e-2, rtol=5e-2), float(jnp.max(jnp.abs(out - ref)))
    print("KERNEL_OK")
</pallas_src>

<mosaic_0001>
module attributes {stable_mosaic.version = 11 : i64} {
  func.func @spam_mlp_kernel(%arg0: i32, %arg1: memref<8x128xf32, #tpu.memory_space<vmem>>, %arg2: memref<128x128xbf16, #tpu.memory_space<vmem>>, %arg3: memref<1x128xf32, #tpu.memory_space<vmem>>, %arg4: memref<128x128xbf16, #tpu.memory_space<vmem>>, %arg5: memref<1x128xf32, #tpu.memory_space<vmem>>, %arg6: memref<1x128xbf16, #tpu.memory_space<vmem>>, %arg7: memref<1x1xf32, #tpu.memory_space<smem>>, %arg8: memref<1x8xf32, #tpu.memory_space<vmem>>) attributes {dimension_semantics = [#tpu.dimension_semantics<parallel>], iteration_bounds = array<i64: 1>, scalar_prefetch = 0 : i64, scratch_operands = 0 : i64, tpu.core_type = #tpu.core_type<tc>, window_params = [{transform_indices = @transform_0, window_bounds = array<i64: 8, 128>}, {pipeline_mode = #tpu.pipeline_mode<synchronous>, transform_indices = @transform_1, window_bounds = array<i64: 128, 128>}, {pipeline_mode = #tpu.pipeline_mode<synchronous>, transform_indices = @transform_2, window_bounds = array<i64: 1, 128>}, {pipeline_mode = #tpu.pipeline_mode<synchronous>, transform_indices = @transform_3, window_bounds = array<i64: 128, 128>}, {pipeline_mode = #tpu.pipeline_mode<synchronous>, transform_indices = @transform_4, window_bounds = array<i64: 1, 128>}, {pipeline_mode = #tpu.pipeline_mode<synchronous>, transform_indices = @transform_5, window_bounds = array<i64: 1, 128>}, {transform_indices = @transform_6, window_bounds = array<i64: 1, 1>}, {transform_indices = @transform_7, window_bounds = array<i64: 1, 8>}]} {
    %c0 = arith.constant 0 : index
    %c0_0 = arith.constant 0 : index
    %0 = vector.load %arg1[%c0, %c0_0] : memref<8x128xf32, #tpu.memory_space<vmem>>, vector<8x128xf32>
    %1 = arith.truncf %0 : vector<8x128xf32> to vector<8x128xbf16>
    %c0_1 = arith.constant 0 : index
    %c0_2 = arith.constant 0 : index
    %2 = vector.load %arg2[%c0_1, %c0_2] : memref<128x128xbf16, #tpu.memory_space<vmem>>, vector<128x128xbf16>
    %cst = arith.constant dense<0.000000e+00> : vector<8x128xf32>
    %3 = tpu.matmul %1, %2, %cst {dimension_numbers = #tpu.dot_dimension_numbers<[1], [0], [0], [1], [0, 0, 1, 1], [], []>} : vector<8x128xbf16>, vector<128x128xbf16>, vector<8x128xf32> -> vector<8x128xf32>
    %c0_3 = arith.constant 0 : index
    %c0_4 = arith.constant 0 : index
    %4 = vector.load %arg3[%c0_3, %c0_4] : memref<1x128xf32, #tpu.memory_space<vmem>>, vector<1x128xf32>
    %5 = vector.broadcast %4 : vector<1x128xf32> to vector<8x128xf32>
    %6 = arith.addf %3, %5 : vector<8x128xf32>
    %cst_5 = arith.constant 0.000000e+00 : f32
    %7 = vector.broadcast %cst_5 : f32 to vector<8x128xf32>
    %8 = arith.maximumf %6, %7 : vector<8x128xf32>
    %9 = arith.truncf %8 : vector<8x128xf32> to vector<8x128xbf16>
    %c0_6 = arith.constant 0 : index
    %c0_7 = arith.constant 0 : index
    %10 = vector.load %arg4[%c0_6, %c0_7] : memref<128x128xbf16, #tpu.memory_space<vmem>>, vector<128x128xbf16>
    %cst_8 = arith.constant dense<0.000000e+00> : vector<8x128xf32>
    %11 = tpu.matmul %9, %10, %cst_8 {dimension_numbers = #tpu.dot_dimension_numbers<[1], [0], [0], [1], [0, 0, 1, 1], [], []>} : vector<8x128xbf16>, vector<128x128xbf16>, vector<8x128xf32> -> vector<8x128xf32>
    %c0_9 = arith.constant 0 : index
    %c0_10 = arith.constant 0 : index
    %12 = vector.load %arg5[%c0_9, %c0_10] : memref<1x128xf32, #tpu.memory_space<vmem>>, vector<1x128xf32>
    %13 = vector.broadcast %12 : vector<1x128xf32> to vector<8x128xf32>
    %14 = arith.addf %11, %13 : vector<8x128xf32>
    %cst_11 = arith.constant 0.000000e+00 : f32
    %15 = vector.broadcast %cst_11 : f32 to vector<8x128xf32>
    %16 = arith.maximumf %14, %15 : vector<8x128xf32>
    %c0_12 = arith.constant 0 : index
    %c0_13 = arith.constant 0 : index
    %17 = vector.load %arg6[%c0_12, %c0_13] : memref<1x128xbf16, #tpu.memory_space<vmem>>, vector<1x128xbf16>
    %18 = arith.truncf %16 : vector<8x128xf32> to vector<8x128xbf16>
    %cst_14 = arith.constant dense<0.000000e+00> : vector<1x8xf32>
    %19 = tpu.matmul %17, %18, %cst_14 {dimension_numbers = #tpu.dot_dimension_numbers<[1], [1], [0], [0], [0, 0, 1, 0], [], []>} : vector<1x128xbf16>, vector<8x128xbf16>, vector<1x8xf32> -> vector<1x8xf32>
    %c0_15 = arith.constant 0 : index
    %c0_16 = arith.constant 0 : index
    %20 = memref.load %arg7[%c0_15, %c0_16] : memref<1x1xf32, #tpu.memory_space<smem>>
    %21 = vector.broadcast %20 : f32 to vector<1x8xf32>
    %22 = arith.addf %19, %21 : vector<1x8xf32>
    %c0_17 = arith.constant 0 : index
    %c0_18 = arith.constant 0 : index
    %23 = vector.load %arg8[%c0_17, %c0_18] : memref<1x8xf32, #tpu.memory_space<vmem>>, vector<1x8xf32>
    tpu.vector_store %arg8[%c0_17, %c0_18], %22 {strides = array<i32>} : memref<1x8xf32, #tpu.memory_space<vmem>>, vector<1x8xf32>,
    return
  }
  func.func @transform_0(%arg0: i32) -> (i32, i32) {
    %c0_i32 = arith.constant 0 : i32
    %c0_i32_0 = arith.constant 0 : i32
    return %arg0, %c0_i32 : i32, i32
  }
  func.func @transform_1(%arg0: i32) -> (i32, i32) {
    %c0_i32 = arith.constant 0 : i32
    %c0_i32_0 = arith.constant 0 : i32
    %c0_i32_1 = arith.constant 0 : i32
    return %c0_i32, %c0_i32_0 : i32, i32
  }
  func.func @transform_2(%arg0: i32) -> (i32, i32) {
    %c0_i32 = arith.constant 0 : i32
    %c0_i32_0 = arith.constant 0 : i32
    %c0_i32_1 = arith.constant 0 : i32
    return %c0_i32, %c0_i32_0 : i32, i32
  }
  func.func @transform_3(%arg0: i32) -> (i32, i32) {
    %c0_i32 = arith.constant 0 : i32
    %c0_i32_0 = arith.constant 0 : i32
    %c0_i32_1 = arith.constant 0 : i32
    return %c0_i32, %c0_i32_0 : i32, i32
  }
  func.func @transform_4(%arg0: i32) -> (i32, i32) {
    %c0_i32 = arith.constant 0 : i32
    %c0_i32_0 = arith.constant 0 : i32
    %c0_i32_1 = arith.constant 0 : i32
    return %c0_i32, %c0_i32_0 : i32, i32
  }
  func.func @transform_5(%arg0: i32) -> (i32, i32) {
    %c0_i32 = arith.constant 0 : i32
    %c0_i32_0 = arith.constant 0 : i32
    %c0_i32_1 = arith.constant 0 : i32
    return %c0_i32, %c0_i32_0 : i32, i32
  }
  func.func @transform_6(%arg0: i32) -> (i32, i32) {
    %c0_i32 = arith.constant 0 : i32
    %c0_i32_0 = arith.constant 0 : i32
    %c0_i32_1 = arith.constant 0 : i32
    return %c0_i32, %c0_i32_0 : i32, i32
  }
  func.func @transform_7(%arg0: i32) -> (i32, i32) {
    %c0_i32 = arith.constant 0 : i32
    %c0_i32_0 = arith.constant 0 : i32
    return %c0_i32, %arg0 : i32, i32
  }
}

module attributes {stable_mosaic.version = 11 : i64} {
  func.func @spam_mlp_kernel(%arg0: i32, %arg1: memref<8x128xf32, #tpu.memory_space<vmem>>, %arg2: memref<128x128xbf16, #tpu.memory_space<vmem>>, %arg3: memref<1x128xf32, #tpu.memory_space<vmem>>, %arg4: memref<128x128xbf16, #tpu.memory_space<vmem>>, %arg5: memref<1x128xf32, #tpu.memory_space<vmem>>, %arg6: memref<1x128xbf16, #tpu.memory_space<vmem>>, %arg7: memref<1x1xf32, #tpu.memory_space<smem>>, %arg8: memref<1x8xf32, #tpu.memory_space<vmem>>) attributes {dimension_semantics = [#tpu.dimension_semantics<parallel>], iteration_bounds = array<i64: 1>, scalar_prefetch = 0 : i64, scratch_operands = 0 : i64, tpu.core_type = #tpu.core_type<tc>, window_params = [{transform_indices = @transform_0, window_bounds = array<i64: 8, 128>}, {pipeline_mode = #tpu.pipeline_mode<synchronous>, transform_indices = @transform_1, window_bounds = array<i64: 128, 128>}, {pipeline_mode = #tpu.pipeline_mode<synchronous>, transform_indices = @transform_2, window_bounds = array<i64: 1, 128>}, {pipeline_mode = #tpu.pipeline_mode<synchronous>, transform_indices = @transform_3, window_bounds = array<i64: 128, 128>}, {pipeline_mode = #tpu.pipeline_mode<synchronous>, transform_indices = @transform_4, window_bounds = array<i64: 1, 128>}, {pipeline_mode = #tpu.pipeline_mode<synchronous>, transform_indices = @transform_5, window_bounds = array<i64: 1, 128>}, {transform_indices = @transform_6, window_bounds = array<i64: 1, 1>}, {transform_indices = @transform_7, window_bounds = array<i64: 1, 8>}]} {
    %c0 = arith.constant 0 : index
    %c0_0 = arith.constant 0 : index
    %0 = vector.load %arg1[%c0, %c0_0] : memref<8x128xf32, #tpu.memory_space<vmem>>, vector<8x128xf32>
    %1 = arith.truncf %0 : vector<8x128xf32> to vector<8x128xbf16>
    %c0_1 = arith.constant 0 : index
    %c0_2 = arith.constant 0 : index
    %2 = vector.load %arg2[%c0_1, %c0_2] : memref<128x128xbf16, #tpu.memory_space<vmem>>, vector<128x128xbf16>
    %cst = arith.constant dense<0.000000e+00> : vector<8x128xf32>
    %3 = tpu.matmul %1, %2, %cst {dimension_numbers = #tpu.dot_dimension_numbers<[1], [0], [0], [1], [0, 0, 1, 1], [], []>} : vector<8x128xbf16>, vector<128x128xbf16>, vector<8x128xf32> -> vector<8x128xf32>
    %c0_3 = arith.constant 0 : index
    %c0_4 = arith.constant 0 : index
    %4 = vector.load %arg3[%c0_3, %c0_4] : memref<1x128xf32, #tpu.memory_space<vmem>>, vector<1x128xf32>
    %5 = vector.broadcast %4 : vector<1x128xf32> to vector<8x128xf32>
    %6 = arith.addf %3, %5 : vector<8x128xf32>
    %cst_5 = arith.constant 0.000000e+00 : f32
    %7 = vector.broadcast %cst_5 : f32 to vector<8x128xf32>
    %8 = arith.maximumf %6, %7 : vector<8x128xf32>
    %9 = arith.truncf %8 : vector<8x128xf32> to vector<8x128xbf16>
    %c0_6 = arith.constant 0 : index
    %c0_7 = arith.constant 0 : index
    %10 = vector.load %arg4[%c0_6, %c0_7] : memref<128x128xbf16, #tpu.memory_space<vmem>>, vector<128x128xbf16>
    %cst_8 = arith.constant dense<0.000000e+00> : vector<8x128xf32>
    %11 = tpu.matmul %9, %10, %cst_8 {dimension_numbers = #tpu.dot_dimension_numbers<[1], [0], [0], [1], [0, 0, 1, 1], [], []>} : vector<8x128xbf16>, vector<128x128xbf16>, vector<8x128xf32> -> vector<8x128xf32>
    %c0_9 = arith.constant 0 : index
    %c0_10 = arith.constant 0 : index
    %12 = vector.load %arg5[%c0_9, %c0_10] : memref<1x128xf32, #tpu.memory_space<vmem>>, vector<1x128xf32>
    %13 = vector.broadcast %12 : vector<1x128xf32> to vector<8x128xf32>
    %14 = arith.addf %11, %13 : vector<8x128xf32>
    %cst_11 = arith.constant 0.000000e+00 : f32
    %15 = vector.broadcast %cst_11 : f32 to vector<8x128xf32>
    %16 = arith.maximumf %14, %15 : vector<8x128xf32>
    %c0_12 = arith.constant 0 : index
    %c0_13 = arith.constant 0 : index
    %17 = vector.load %arg6[%c0_12, %c0_13] : memref<1x128xbf16, #tpu.memory_space<vmem>>, vector<1x128xbf16>
    %18 = arith.truncf %16 : vector<8x128xf32> to vector<8x128xbf16>
    %cst_14 = arith.constant dense<0.000000e+00> : vector<1x8xf32>
    %19 = tpu.matmul %17, %18, %cst_14 {dimension_numbers = #tpu.dot_dimension_numbers<[1], [1], [0], [0], [0, 0, 1, 0], [], []>} : vector<1x128xbf16>, vector<8x128xbf16>, vector<1x8xf32> -> vector<1x8xf32>
    %c0_15 = arith.constant 0 : index
    %c0_16 = arith.constant 0 : index
    %20 = memref.load %arg7[%c0_15, %c0_16] : memref<1x1xf32, #tpu.memory_space<smem>>
    %21 = vector.broadcast %20 : f32 to vector<1x8xf32>
    %22 = arith.addf %19, %21 : vector<1x8xf32>
    %c0_17 = arith.constant 0 : index
    %c0_18 = arith.constant 0 : index
    %23 = vector.load %arg8[%c0_17, %c0_18] : memref<1x8xf32, #tpu.memory_space<vmem>>, vector<1x8xf32>
    tpu.vector_store %arg8[%c0_17, %c0_18], %22 {strides = array<i32>} : memref<1x8xf32, #tpu.memory_space<vmem>>, vector<1x8xf32>,
    return
  }
  func.func @transform_0(%arg0: i32) -> (i32, i32) {
    %c0_i32 = arith.constant 0 : i32
    %c0_i32_0 = arith.constant 0 : i32
    return %arg0, %c0_i32 : i32, i32
  }
  func.func @transform_1(%arg0: i32) -> (i32, i32) {
    %c0_i32 = arith.constant 0 : i32
    %c0_i32_0 = arith.constant 0 : i32
    %c0_i32_1 = arith.constant 0 : i32
    return %c0_i32, %c0_i32_0 : i32, i32
  }
  func.func @transform_2(%arg0: i32) -> (i32, i32) {
    %c0_i32 = arith.constant 0 : i32
    %c0_i32_0 = arith.constant 0 : i32
    %c0_i32_1 = arith.constant 0 : i32
    return %c0_i32, %c0_i32_0 : i32, i32
  }
  func.func @transform_3(%arg0: i32) -> (i32, i32) {
    %c0_i32 = arith.constant 0 : i32
    %c0_i32_0 = arith.constant 0 : i32
    %c0_i32_1 = arith.constant 0 : i32
    return %c0_i32, %c0_i32_0 : i32, i32
  }
  func.func @transform_4(%arg0: i32) -> (i32, i32) {
    %c0_i32 = arith.constant 0 : i32
    %c0_i32_0 = arith.constant 0 : i32
    %c0_i32_1 = arith.constant 0 : i32
    return %c0_i32, %c0_i32_0 : i32, i32
  }
  func.func @transform_5(%arg0: i32) -> (i32, i32) {
    %c0_i32 = arith.constant 0 : i32
    %c0_i32_0 = arith.constant 0 : i32
    %c0_i32_1 = arith.constant 0 : i32
    return %c0_i32, %c0_i32_0 : i32, i32
  }
  func.func @transform_6(%arg0: i32) -> (i32, i32) {
    %c0_i32 = arith.constant 0 : i32
    %c0_i32_0 = arith.constant 0 : i32
    %c0_i32_1 = arith.constant 0 : i32
    return %c0_i32, %c0_i32_0 : i32, i32
  }
  func.func @transform_7(%arg0: i32) -> (i32, i32) {
    %c0_i32 = arith.constant 0 : i32
    %c0_i32_0 = arith.constant 0 : i32
    return %c0_i32, %arg0 : i32, i32
  }
}

</mosaic_0001>

<bundles_post_ra>
// kernel: tpu_custom_call.1
= control target key start
LH: loop header
LB: loop body
LE: loop exit
PB: predicated region body
PF: predicated region fallthrough
CT: control target
= control target key end

     0   :  { %13 = vsyncpa [#allocation4], 0  ;;  %s538_s0 = inlined_call_operand.hbm [shape: f32[8,128], index: 0, kind: input, shape index: {}]   ;;  %s539_s1 = inlined_call_operand.hbm [shape: bf16[128,128], index: 1, kind: input, shape index: {}]   ;;  %s540_s2 = inlined_call_operand.vmem [shape: f32[1,128], index: 2, kind: input, shape index: {}]   ;;  %s541_s3 = inlined_call_operand.hbm [shape: bf16[128,128], index: 3, kind: input, shape index: {}]   ;;  %s542_s4 = inlined_call_operand.vmem [shape: f32[1,128], index: 4, kind: input, shape index: {}]   ;;  %s543_s5 = inlined_call_operand.vmem [shape: bf16[1,128], index: 5, kind: input, shape index: {}]   ;;  %s544_s6 = inlined_call_operand.<no memory space> [shape: f32[1,1], index: 6, kind: input, shape index: {}]   ;;  %s545_s7 = inlined_call_operand.hbm [shape: f32[1,8], index: 7, kind: output, shape index: {}]  }
   0x1   :  { %14 = vsyncpa [#allocation7], 0  ;;  %s31_s26 = sshll.u32 %s539_s1, 4  ;;  %s32_s26 = int_to_ptr.hbm [resolvable:$true] %s31_s26 }
   0x2   :  { %15 = vsyncpa [#allocation5], 0  ;;  %s468_s27 = smov [#allocation6]   ;;  %s21_s8 = sshll.u32 %s538_s0, 4  ;;  %s22_s8 = int_to_ptr.hbm [resolvable:$true] %s21_s8 }
   0x3   :  { %s33_s28 = sshll.u32 %s468_s27, 4  ;;  %s469_s9 = smov 64   ;;  %s34_s28 = int_to_ptr.vmem [resolvable:$true] %s33_s28 }
   0x4   :  { %s470_s10 = smov 4   ;;  %s471_s11 = smov [#allocation3]  }
   0x5   :  { %39 = dma.hbm_to_vmem [thread:$0]  %s32_s26, 1024, %s34_s28, [#allocation7], %s469_s9, %s469_s9, %s470_s10  }
   0x6   :  { %s23_s12 = sshll.u32 %s471_s11, 4  ;;  %s46_s15 = sshll.u32 %s541_s3, 4  ;;  %s24_s12 = int_to_ptr.vmem [resolvable:$true] %s23_s12  ;;  %s47_s15 = int_to_ptr.hbm [resolvable:$true] %s46_s15 }
   0x7   :  { %26 = dma.hbm_to_vmem [thread:$0]  %s22_s8, 128, %s24_s12, [#allocation4]  }
   0x8   :  { %s472_s1 = smov [#allocation8]  }
   0x9   :  { %s48_s16 = sshll.u32 %s472_s1, 4  ;;  %s49_s16 = int_to_ptr.vmem [resolvable:$true] %s48_s16 }
   0xa   :  { %54 = dma.hbm_to_vmem [thread:$0]  %s47_s15, 1024, %s49_s16, [#allocation7], %s469_s9, %s469_s9, %s470_s10  }
   0xb   :  { %462 = dma.done.wait [#allocation4], 128  }
   0xc   :  { %463 = vsyncadd [#allocation4], 4294967168 }
   0xd   :  { %464 = dma.done.wait [#allocation7], 2048  }
   0xe   :  { %465 = vsyncadd [#allocation7], 4294965248  ;;  %v349_v0 = vld [vmem:[#allocation6 + $0x38] sm:$0xff]  ;;  %v348_v1 = vld [vmem:[#allocation6 + $0x30] sm:$0xff]  ;;  %v244_v31 = vstv %s544_s6  ;;  %s473_s22 = smov [#allocation9]   ;;  %vm258_vm0 = vcmask 57344  }
   0xf   :  { %144 = vmatpush.bf16.msra.mxu0 %v349_v0  ;;  %v357_v2 = vld [vmem:[#allocation8 + $0x38] sm:$0xff]  ;;  %v356_v3 = vld [vmem:[#allocation8 + $0x30] sm:$0xff]  ;;  %v347_v4 = vld [vmem:[#allocation6 + $0x28] sm:$0xff]  ;;  %s265_s23 = sshll.u32 %s473_s22, 4  ;;  %s266_s23 = int_to_ptr.vmem [resolvable:$true] %s265_s23 }
  0x10   :  { %227 = vmatpush.bf16.msra.mxu1 %v357_v2  ;;  %v355_v5 = vld [vmem:[#allocation8 + $0x28] sm:$0xff]  ;;  %v346_v6 = vld [vmem:[#allocation6 + $0x20] sm:$0xff]  ;;  %v345_v8 = vld [vmem:[#allocation6 + $0x18] sm:$0xff] }
  0x11   :  { %v354_v7 = vld [vmem:[#allocation8 + $0x20] sm:$0xff]  ;;  %v353_v9 = vld [vmem:[#allocation8 + $0x18] sm:$0xff]  ;;  %v344_v10 = vld [vmem:[#allocation6 + $0x10] sm:$0xff] }
  0x12   :  { %v352_v11 = vld [vmem:[#allocation8 + $0x10] sm:$0xff]  ;;  %v343_v12 = vld [vmem:[#allocation6 + $0x8] sm:$0xff]  ;;  %v342_v13 = vld [vmem:[#allocation6] sm:$0xff] }
  0x13   :  { %145 = vmatpush.bf16.msra.mxu0 %v348_v1  ;;  %v74_v14 = vld [vmem:[#allocation3] sm:$0xff]  ;;  %v351_v16 = vld [vmem:[#allocation8 + $0x8] sm:$0xff]  ;;  %v350_v17 = vld [vmem:[#allocation8] sm:$0xff] }
  0x14   :  { %228 = vmatpush.bf16.msra.mxu1 %v356_v3  ;;  %v75_v15 = vpack.c.bf16 %v74_v14, %v74_v14  ;;  %v364_v18 = vld [vmem:[%s540_s2] ss:$0 sm:$0xff] }
  0x15   :  { %v365_v24 = vld [vmem:[%s542_s4] ss:$0 sm:$0xff]  ;;  %s267_s4 = sshll.u32 %s545_s7, 4  ;;  %s268_s4 = int_to_ptr.hbm [resolvable:$true] %s267_s4 }
  0x16   :  { %v241_v30 = vld [vmem:[%s543_s5] sm:$0x1] }
  0x17   :  { %146 = vmatpush.bf16.msra.mxu0 %v347_v4 }
  0x18   :  { %229 = vmatpush.bf16.msra.mxu1 %v355_v5 }
  0x1b   :  { %147 = vmatpush.bf16.msra.mxu0 %v346_v6 }
  0x1c   :  { %230 = vmatpush.bf16.msra.mxu1 %v354_v7 }
  0x1f   :  { %148 = vmatpush.bf16.msra.mxu0 %v345_v8 }
  0x20   :  { %231 = vmatpush.bf16.msra.mxu1 %v353_v9 }
  0x23   :  { %149 = vmatpush.bf16.msra.mxu0 %v344_v10 }
  0x24   :  { %232 = vmatpush.bf16.msra.mxu1 %v352_v11 }
  0x27   :  { %150 = vmatpush.bf16.msra.mxu0 %v343_v12 }
  0x28   :  { %233 = vmatpush.bf16.msra.mxu1 %v351_v16 }
  0x2b   :  { %151 = vmatpush.bf16.msra.mxu0 %v342_v13 }
  0x2c   :  { %234 = vmatpush.bf16.msra.mxu1 %v350_v17 }
  0x2e   :  { %152 = vmatmul.bf16.vlgmr.msra.gmra.mxu0 %v75_v15 }
  0xab   :  { %v153_v19 = vpop.f32.mrf.mxu0 }
  0xac   :  { %v154_v20 = vadd.f32 %v364_v18, %v153_v19 }
  0xae   :  { %v157_v21 = vmax.f32 %v154_v20, 0.0 }
  0xb0   :  { %v158_v22 = vpack.c.bf16 %v157_v21, %v157_v21 }
  0xb2   :  { %235 = vmatmul.bf16.vlgmr.msra.gmra.mxu1 %v158_v22 }
  0xb3   :  { %v155_v23 = vpop.f32.mrf.mxu0 }
 0x12f   :  { %v236_v25 = vpop.f32.mrf.mxu1 }
 0x130   :  { %v237_v26 = vadd.f32 %v365_v24, %v236_v25 }
 0x132   :  { %v240_v27 = vmax.f32 %v237_v26, 0.0 }
 0x134   :  { %v242_v28 = vpack.c.bf16 %v240_v27, %v240_v27 }
 0x136   :  { %252 = vmatpush.bf16.xpose.msra.mxu2 %v242_v28 }
 0x137   :  { %v238_v29 = vpop.f32.mrf.mxu1 }
 0x13d   :  { %253 = vmatmul.bf16.vlgmr.msra.gmra.mxu2 %v241_v30 }
 0x1c0   :  { %v254_v32 = vpop.f32.mrf.mxu2 }
 0x1c1   :  { %v255_v33 = vadd.f32 %v254_v32, %v244_v31 }
 0x1c3   :  { %259 = vst.msk [vmem:[#allocation9] sm:$0x1] %vm258_vm0, %v255_v33 }
 0x1c4   :  { %270 = dma.vmem_to_hbm [thread:$0]  %s266_s23, 16, %s268_s4, [#allocation5]  }
 0x1c8   :  { %v256_v34 = vpop.f32.mrf.mxu2 }
 0x1c9   :  { %466 = dma.done.wait [#allocation5], 16  }
 0x1ca   :  { %467 = vsyncadd [#allocation5], 4294967280 }
 0x1cb   :  { %275 = vsyncpa [#allocation4], 1 }
 0x1cc   :  { %276 = vsyncpa [#allocation7], 1 }
 0x1cd   :  { %277 = vsyncpa [#allocation5], 1 }

// kernel: tpu_custom_call.1
= control target key start
LH: loop header
LB: loop body
LE: loop exit
PB: predicated region body
PF: predicated region fallthrough
CT: control target
= control target key end

     0   :  { %13 = vsyncpa [#allocation4], 0  ;;  %s538_s0 = inlined_call_operand.hbm [shape: f32[8,128], index: 0, kind: input, shape index: {}]   ;;  %s539_s1 = inlined_call_operand.hbm [shape: bf16[128,128], index: 1, kind: input, shape index: {}]   ;;  %s540_s2 = inlined_call_operand.vmem [shape: f32[1,128], index: 2, kind: input, shape index: {}]   ;;  %s541_s3 = inlined_call_operand.hbm [shape: bf16[128,128], index: 3, kind: input, shape index: {}]   ;;  %s542_s4 = inlined_call_operand.vmem [shape: f32[1,128], index: 4, kind: input, shape index: {}]   ;;  %s543_s5 = inlined_call_operand.vmem [shape: bf16[1,128], index: 5, kind: input, shape index: {}]   ;;  %s544_s6 = inlined_call_operand.<no memory space> [shape: f32[1,1], index: 6, kind: input, shape index: {}]   ;;  %s545_s7 = inlined_call_operand.hbm [shape: f32[1,8], index: 7, kind: output, shape index: {}]  }
   0x1   :  { %14 = vsyncpa [#allocation7], 0  ;;  %s31_s26 = sshll.u32 %s539_s1, 4  ;;  %s32_s26 = int_to_ptr.hbm [resolvable:$true] %s31_s26 }
   0x2   :  { %15 = vsyncpa [#allocation5], 0  ;;  %s468_s27 = smov [#allocation6]   ;;  %s21_s8 = sshll.u32 %s538_s0, 4  ;;  %s22_s8 = int_to_ptr.hbm [resolvable:$true] %s21_s8 }
   0x3   :  { %s33_s28 = sshll.u32 %s468_s27, 4  ;;  %s469_s9 = smov 64   ;;  %s34_s28 = int_to_ptr.vmem [resolvable:$true] %s33_s28 }
   0x4   :  { %s470_s10 = smov 4   ;;  %s471_s11 = smov [#allocation3]  }
   0x5   :  { %39 = dma.hbm_to_vmem [thread:$0]  %s32_s26, 1024, %s34_s28, [#allocation7], %s469_s9, %s469_s9, %s470_s10  }
   0x6   :  { %s23_s12 = sshll.u32 %s471_s11, 4  ;;  %s46_s15 = sshll.u32 %s541_s3, 4  ;;  %s24_s12 = int_to_ptr.vmem [resolvable:$true] %s23_s12  ;;  %s47_s15 = int_to_ptr.hbm [resolvable:$true] %s46_s15 }
   0x7   :  { %26 = dma.hbm_to_vmem [thread:$0]  %s22_s8, 128, %s24_s12, [#allocation4]  }
   0x8   :  { %s472_s1 = smov [#allocation8]  }
   0x9   :  { %s48_s16 = sshll.u32 %s472_s1, 4  ;;  %s49_s16 = int_to_ptr.vmem [resolvable:$true] %s48_s16 }
   0xa   :  { %54 = dma.hbm_to_vmem [thread:$0]  %s47_s15, 1024, %s49_s16, [#allocation7], %s469_s9, %s469_s9, %s470_s10  }
   0xb   :  { %462 = dma.done.wait [#allocation4], 128  }
   0xc   :  { %463 = vsyncadd [#allocation4], 4294967168 }
   0xd   :  { %464 = dma.done.wait [#allocation7], 2048  }
   0xe   :  { %465 = vsyncadd [#allocation7], 4294965248  ;;  %v349_v0 = vld [vmem:[#allocation6 + $0x38] sm:$0xff]  ;;  %v348_v1 = vld [vmem:[#allocation6 + $0x30] sm:$0xff]  ;;  %v244_v31 = vstv %s544_s6  ;;  %s473_s22 = smov [#allocation9]   ;;  %vm258_vm0 = vcmask 57344  }
   0xf   :  { %144 = vmatpush.bf16.msra.mxu0 %v349_v0  ;;  %v357_v2 = vld [vmem:[#allocation8 + $0x38] sm:$0xff]  ;;  %v356_v3 = vld [vmem:[#allocation8 + $0x30] sm:$0xff]  ;;  %v347_v4 = vld [vmem:[#allocation6 + $0x28] sm:$0xff]  ;;  %s265_s23 = sshll.u32 %s473_s22, 4  ;;  %s266_s23 = int_to_ptr.vmem [resolvable:$true] %s265_s23 }
  0x10   :  { %227 = vmatpush.bf16.msra.mxu1 %v357_v2  ;;  %v355_v5 = vld [vmem:[#allocation8 + $0x28] sm:$0xff]  ;;  %v346_v6 = vld [vmem:[#allocation6 + $0x20] sm:$0xff]  ;;  %v345_v8 = vld [vmem:[#allocation6 + $0x18] sm:$0xff] }
  0x11   :  { %v354_v7 = vld [vmem:[#allocation8 + $0x20] sm:$0xff]  ;;  %v353_v9 = vld [vmem:[#allocation8 + $0x18] sm:$0xff]  ;;  %v344_v10 = vld [vmem:[#allocation6 + $0x10] sm:$0xff] }
  0x12   :  { %v352_v11 = vld [vmem:[#allocation8 + $0x10] sm:$0xff]  ;;  %v343_v12 = vld [vmem:[#allocation6 + $0x8] sm:$0xff]  ;;  %v342_v13 = vld [vmem:[#allocation6] sm:$0xff] }
  0x13   :  { %145 = vmatpush.bf16.msra.mxu0 %v348_v1  ;;  %v74_v14 = vld [vmem:[#allocation3] sm:$0xff]  ;;  %v351_v16 = vld [vmem:[#allocation8 + $0x8] sm:$0xff]  ;;  %v350_v17 = vld [vmem:[#allocation8] sm:$0xff] }
  0x14   :  { %228 = vmatpush.bf16.msra.mxu1 %v356_v3  ;;  %v75_v15 = vpack.c.bf16 %v74_v14, %v74_v14  ;;  %v364_v18 = vld [vmem:[%s540_s2] ss:$0 sm:$0xff] }
  0x15   :  { %v365_v24 = vld [vmem:[%s542_s4] ss:$0 sm:$0xff]  ;;  %s267_s4 = sshll.u32 %s545_s7, 4  ;;  %s268_s4 = int_to_ptr.hbm [resolvable:$true] %s267_s4 }
  0x16   :  { %v241_v30 = vld [vmem:[%s543_s5] sm:$0x1] }
  0x17   :  { %146 = vmatpush.bf16.msra.mxu0 %v347_v4 }
  0x18   :  { %229 = vmatpush.bf16.msra.mxu1 %v355_v5 }
  0x1b   :  { %147 = vmatpush.bf16.msra.mxu0 %v346_v6 }
  0x1c   :  { %230 = vmatpush.bf16.msra.mxu1 %v354_v7 }
  0x1f   :  { %148 = vmatpush.bf16.msra.mxu0 %v345_v8 }
  0x20   :  { %231 = vmatpush.bf16.msra.mxu1 %v353_v9 }
  0x23   :  { %149 = vmatpush.bf16.msra.mxu0 %v344_v10 }
  0x24   :  { %232 = vmatpush.bf16.msra.mxu1 %v352_v11 }
  0x27   :  { %150 = vmatpush.bf16.msra.mxu0 %v343_v12 }
  0x28   :  { %233 = vmatpush.bf16.msra.mxu1 %v351_v16 }
  0x2b   :  { %151 = vmatpush.bf16.msra.mxu0 %v342_v13 }
  0x2c   :  { %234 = vmatpush.bf16.msra.mxu1 %v350_v17 }
  0x2e   :  { %152 = vmatmul.bf16.vlgmr.msra.gmra.mxu0 %v75_v15 }
  0xab   :  { %v153_v19 = vpop.f32.mrf.mxu0 }
  0xac   :  { %v154_v20 = vadd.f32 %v364_v18, %v153_v19 }
  0xae   :  { %v157_v21 = vmax.f32 %v154_v20, 0.0 }
  0xb0   :  { %v158_v22 = vpack.c.bf16 %v157_v21, %v157_v21 }
  0xb2   :  { %235 = vmatmul.bf16.vlgmr.msra.gmra.mxu1 %v158_v22 }
  0xb3   :  { %v155_v23 = vpop.f32.mrf.mxu0 }
 0x12f   :  { %v236_v25 = vpop.f32.mrf.mxu1 }
 0x130   :  { %v237_v26 = vadd.f32 %v365_v24, %v236_v25 }
 0x132   :  { %v240_v27 = vmax.f32 %v237_v26, 0.0 }
 0x134   :  { %v242_v28 = vpack.c.bf16 %v240_v27, %v240_v27 }
 0x136   :  { %252 = vmatpush.bf16.xpose.msra.mxu2 %v242_v28 }
 0x137   :  { %v238_v29 = vpop.f32.mrf.mxu1 }
 0x13d   :  { %253 = vmatmul.bf16.vlgmr.msra.gmra.mxu2 %v241_v30 }
 0x1c0   :  { %v254_v32 = vpop.f32.mrf.mxu2 }
 0x1c1   :  { %v255_v33 = vadd.f32 %v254_v32, %v244_v31 }
 0x1c3   :  { %259 = vst.msk [vmem:[#allocation9] sm:$0x1] %vm258_vm0, %v255_v33 }
 0x1c4   :  { %270 = dma.vmem_to_hbm [thread:$0]  %s266_s23, 16, %s268_s4, [#allocation5]  }
 0x1c8   :  { %v256_v34 = vpop.f32.mrf.mxu2 }
 0x1c9   :  { %466 = dma.done.wait [#allocation5], 16  }
 0x1ca   :  { %467 = vsyncadd [#allocation5], 4294967280 }
 0x1cb   :  { %275 = vsyncpa [#allocation4], 1 }
 0x1cc   :  { %276 = vsyncpa [#allocation7], 1 }
 0x1cd   :  { %277 = vsyncpa [#allocation5], 1 }

</bundles_post_ra>
